<compile_context>
chip_gen: v7x
topology: tpu7x:2x2x1
jax: 0.10.0
libtpu: 0.0.40
codegen_flags: <defaults>
</compile_context>

<pallas_src>
import jax
import jax.numpy as jnp
from jax.experimental import pallas as pl
from jax.experimental.pallas import tpu as pltpu


def _num_tensorcores():
    """Best-effort TensorCore count of the local device (2 on v7x, else 1)."""
    try:
        d = jax.devices()[0]
        nc = getattr(d, "num_cores", None)
        if isinstance(nc, int) and nc > 0:
            return nc
        kind = str(getattr(d, "device_kind", "")).lower()
        if "v7" in kind:
            return 2
    except Exception:
        pass
    return 1


def _pick_num_row_blocks(rows, lanes, itemsize, n_tc):
    """Row-block count.

    One block per TensorCore at small sizes (so "parallel" shards across TCs on
    v7x, single maximal block on v5e/v6e); split further only while each block
    still moves >= ~1 MiB, i.e. its DMA time exceeds the ~0.35 us per-grid-step
    overhead.  Row blocks must respect the packed sublane granularity.
    """
    sub = {4: 8, 2: 16, 1: 32}.get(itemsize, 8)

    def divides(nblk):
        return nblk >= 1 and rows % nblk == 0 and (rows // nblk) % sub == 0

    nblk = n_tc if (n_tc > 1 and divides(n_tc)) else 1
    bytes_total = rows * lanes * itemsize
    while divides(nblk * 2) and bytes_total // (nblk * 2) >= (1 << 20):
        nblk *= 2
    return nblk


def _make_scale_mul_kernel(br):
    def kernel(x_ref, s_ref, o_ref):
        # x_ref: (br, S) feature tile for this grid step.
        # s_ref: (rows, 1) full per-channel scale, resident in VMEM (constant
        #        block index => fetched once); slice out this step's rows.
        i = pl.program_id(0)
        start = pl.multiple_of(i * br, br)
        s = s_ref[pl.ds(start, br), :]          # (br, 1)
        o_ref[...] = x_ref[...] * s
    return kernel


def broadcast_mul(x180, x175, *, donate_input=False):
    """Computes x180 * x175 with x180 shaped (N, C, 1, 1) and x175 (N, C, H, W).

    Set donate_input=True only when x175 is genuinely donated/dead after this
    op (e.g. via jit donate_argnums); otherwise XLA inserts a defensive copy.
    """
    n, c, h, w = x175.shape
    assert x180.shape == (n, c, 1, 1)

    rows, lanes = n * c, h * w
    itemsize = jnp.dtype(x175.dtype).itemsize
    x2d = x175.reshape(rows, lanes)                 # (R, S): C -> sublanes, H*W -> lanes
    s2d = x180.reshape(rows, 1).astype(x175.dtype)  # (R, 1): per-row scale

    nblk = _pick_num_row_blocks(rows, lanes, itemsize, _num_tensorcores())
    br = rows // nblk

    cost = pl.CostEstimate(
        flops=rows * lanes,
        transcendentals=0,
        bytes_accessed=2 * rows * lanes * itemsize + rows * itemsize,
    )

    kwargs = {}
    if donate_input:
        # Elementwise op: output may reuse the feature-map buffer when donated.
        kwargs["input_output_aliases"] = {0: 0}

    out2d = pl.pallas_call(
        _make_scale_mul_kernel(br),
        out_shape=jax.ShapeDtypeStruct((rows, lanes), x2d.dtype),
        grid=(nblk,),
        in_specs=[
            pl.BlockSpec((br, lanes), lambda i: (i, 0)),   # feature tile (pipelined)
            pl.BlockSpec((rows, 1), lambda i: (0, 0)),     # scale: resident, 1 DMA
        ],
        out_specs=pl.BlockSpec((br, lanes), lambda i: (i, 0)),
        compiler_params=pltpu.CompilerParams(
            # Row blocks are independent -> shard across both v7x TensorCores.
            dimension_semantics=("parallel",),
        ),
        cost_estimate=cost,
        **kwargs,
    )(x2d, s2d)

    return out2d.reshape(n, c, h, w)


if __name__ == "__main__":
    key = jax.random.PRNGKey(0)
    k1, k2 = jax.random.split(key)

    # Shapes implied by the module's forward.
    x175 = jax.random.normal(k1, (1, 320, 14, 14), dtype=jnp.float32)
    x180 = jax.random.normal(k2, (1, 320, 1, 1), dtype=jnp.float32)

    ref = x180 * x175

    out = broadcast_mul(x180, x175)   # no aliasing: inputs are not donated here
    jax.block_until_ready(out)

    assert out.shape == ref.shape
    assert jnp.allclose(out, ref, atol=1e-6, rtol=1e-6)

    print("KERNEL_OK")
</pallas_src>

<mosaic_0001>
module attributes {stable_mosaic.version = 11 : i64} {
  func.func @kernel(%arg0: i32, %arg1: memref<320x196xf32, #tpu.memory_space<vmem>>, %arg2: memref<320x1xf32, #tpu.memory_space<vmem>>, %arg3: memref<320x196xf32, #tpu.memory_space<vmem>>) attributes {dimension_semantics = [#tpu.dimension_semantics<parallel>], iteration_bounds = array<i64: 1>, scalar_prefetch = 0 : i64, scratch_operands = 0 : i64, tpu.core_type = #tpu.core_type<tc>, window_params = [{transform_indices = @transform_0, window_bounds = array<i64: 320, 196>}, {pipeline_mode = #tpu.pipeline_mode<synchronous>, transform_indices = @transform_1, window_bounds = array<i64: 320, 1>}, {transform_indices = @transform_2, window_bounds = array<i64: 320, 196>}]} {
    %c320_i32 = arith.constant 320 : i32
    %0 = arith.muli %arg0, %c320_i32 : i32
    %1 = tpu.assume_multiple %0, 320 : i32
    %2 = arith.index_cast %1 : i32 to index
    %c0 = arith.constant 0 : index
    %3 = vector.load %arg2[%2, %c0] : memref<320x1xf32, #tpu.memory_space<vmem>>, vector<320x1xf32>
    %c0_0 = arith.constant 0 : index
    %c0_1 = arith.constant 0 : index
    %4 = vector.load %arg1[%c0_0, %c0_1] : memref<320x196xf32, #tpu.memory_space<vmem>>, vector<320x196xf32>
    %5 = vector.broadcast %3 : vector<320x1xf32> to vector<320x196xf32>
    %6 = arith.mulf %4, %5 : vector<320x196xf32>
    %c0_2 = arith.constant 0 : index
    %c0_3 = arith.constant 0 : index
    %7 = vector.load %arg3[%c0_2, %c0_3] : memref<320x196xf32, #tpu.memory_space<vmem>>, vector<320x196xf32>
    tpu.vector_store %arg3[%c0_2, %c0_3], %6 {strides = array<i32>} : memref<320x196xf32, #tpu.memory_space<vmem>>, vector<320x196xf32>,
    return
  }
  func.func @transform_0(%arg0: i32) -> (i32, i32) {
    %c0_i32 = arith.constant 0 : i32
    %c0_i32_0 = arith.constant 0 : i32
    return %arg0, %c0_i32 : i32, i32
  }
  func.func @transform_1(%arg0: i32) -> (i32, i32) {
    %c0_i32 = arith.constant 0 : i32
    %c0_i32_0 = arith.constant 0 : i32
    %c0_i32_1 = arith.constant 0 : i32
    return %c0_i32, %c0_i32_0 : i32, i32
  }
  func.func @transform_2(%arg0: i32) -> (i32, i32) {
    %c0_i32 = arith.constant 0 : i32
    %c0_i32_0 = arith.constant 0 : i32
    return %arg0, %c0_i32 : i32, i32
  }
}

</mosaic_0001>

<bundles_post_ra>
// kernel: tpu_custom_call.1
= control target key start
LH: loop header
LB: loop body
LE: loop exit
PB: predicated region body
PF: predicated region fallthrough
CT: control target
= control target key end

     0   :  { %v501_v0 = vmov 0   ;;  %vm414_vm0 = vcmask 556032   ;;  %s1157_s1 = inlined_call_operand.vmem [shape: f32[320,1], index: 1, kind: input, shape index: {}]   ;;  %s1158_s0 = inlined_call_operand.vmem [shape: f32[320,196], index: 0, kind: input, shape index: {}]   ;;  %s1159_s2 = inlined_call_operand.vmem [shape: f32[320,196], index: 2, kind: output, shape index: {}]  }
   0x1   :  { %500 = vset.pattern.permute.xlu1 %v501_v0  ;;  %499 = vset.pattern.permute.xlu0 %v501_v0  ;;  %v15_v1 = vld [vmem:[%s1157_s1 + $0x10] sm:$0xff]  ;;  %v13_v2 = vld [vmem:[%s1157_s1] sm:$0xff]  ;;  %v16_v3 = vld [vmem:[%s1157_s1 + $0x18] sm:$0xff] }
   0x2   :  { %145 = vperm.xlu1 %500, %v15_v1   ;;  %135 = vperm.xlu0 %499, %v13_v2   ;;  %v14_v4 = vld [vmem:[%s1157_s1 + $0x8] sm:$0xff]  ;;  %v17_v6 = vld [vmem:[%s1157_s1 + $0x20] sm:$0xff]  ;;  %v20_v7 = vld [vmem:[%s1157_s1 + $0x38] sm:$0xff] }
   0x3   :  { %v18_v5 = vld [vmem:[%s1157_s1 + $0x28] sm:$0xff]  ;;  %v19_v8 = vld [vmem:[%s1157_s1 + $0x30] sm:$0xff]  ;;  %v21_v10 = vld [vmem:[%s1157_s1 + $0x40] sm:$0xff] }
   0x4   :  { %v22_v9 = vld [vmem:[%s1157_s1 + $0x48] sm:$0xff]  ;;  %v24_v11 = vld [vmem:[%s1157_s1 + $0x58] sm:$0xff]  ;;  %v23_v12 = vld [vmem:[%s1157_s1 + $0x50] sm:$0xff] }
   0x5   :  { %v26_v13 = vld [vmem:[%s1157_s1 + $0x68] sm:$0xff]  ;;  %v25_v14 = vld [vmem:[%s1157_s1 + $0x60] sm:$0xff]  ;;  %v28_v15 = vld [vmem:[%s1157_s1 + $0x78] sm:$0xff] }
   0x6   :  { %150 = vperm.xlu1 %500, %v16_v3   ;;  %140 = vperm.xlu0 %499, %v14_v4   ;;  %v27_v16 = vld [vmem:[%s1157_s1 + $0x70] sm:$0xff]  ;;  %v30_v17 = vld [vmem:[%s1157_s1 + $0x88] sm:$0xff]  ;;  %v29_v18 = vld [vmem:[%s1157_s1 + $0x80] sm:$0xff] }
   0x7   :  { %v32_v19 = vld [vmem:[%s1157_s1 + $0x98] sm:$0xff]  ;;  %v31_v20 = vld [vmem:[%s1157_s1 + $0x90] sm:$0xff]  ;;  %v34_v21 = vld [vmem:[%s1157_s1 + $0xa8] sm:$0xff] }
   0x8   :  { %v33_v22 = vld [vmem:[%s1157_s1 + $0xa0] sm:$0xff]  ;;  %v36_v23 = vld [vmem:[%s1157_s1 + $0xb8] sm:$0xff]  ;;  %v35_v24 = vld [vmem:[%s1157_s1 + $0xb0] sm:$0xff] }
   0x9   :  { %v38_v25 = vld [vmem:[%s1157_s1 + $0xc8] sm:$0xff]  ;;  %v37_v26 = vld [vmem:[%s1157_s1 + $0xc0] sm:$0xff]  ;;  %v40_v27 = vld [vmem:[%s1157_s1 + $0xd8] sm:$0xff] }
   0xa   :  { %160 = vperm.xlu1 %500, %v18_v5   ;;  %155 = vperm.xlu0 %499, %v17_v6   ;;  %v39_v28 = vld [vmem:[%s1157_s1 + $0xd0] sm:$0xff]  ;;  %v42_v29 = vld [vmem:[%s1157_s1 + $0xe8] sm:$0xff]  ;;  %v41_v30 = vld [vmem:[%s1157_s1 + $0xe0] sm:$0xff] }
   0xb   :  { %v44_v31 = vld [vmem:[%s1157_s1 + $0xf8] sm:$0xff]  ;;  %v43_v32 = vld [vmem:[%s1157_s1 + $0xf0] sm:$0xff]  ;;  %v46_v33 = vld [vmem:[%s1157_s1 + $0x108] sm:$0xff] }
   0xc   :  { %v45_v34 = vld [vmem:[%s1157_s1 + $0x100] sm:$0xff]  ;;  %v48_v35 = vld [vmem:[%s1157_s1 + $0x118] sm:$0xff]  ;;  %v47_v36 = vld [vmem:[%s1157_s1 + $0x110] sm:$0xff] }
   0xd   :  { %v50_v37 = vld [vmem:[%s1157_s1 + $0x128] sm:$0xff]  ;;  %v49_v38 = vld [vmem:[%s1157_s1 + $0x120] sm:$0xff]  ;;  %v52_v39 = vld [vmem:[%s1157_s1 + $0x138] sm:$0xff] }
   0xe   :  { %170 = vperm.xlu1 %500, %v20_v7   ;;  %165 = vperm.xlu0 %499, %v19_v8   ;;  %v51_v40 = vld [vmem:[%s1157_s1 + $0x130] sm:$0xff]  ;;  %v57_v41 = vld [vmem:[%s1158_s0 + $0x20] sm:$0xff]  ;;  %v58_v42 = vld [vmem:[%s1158_s0 + $0x28] sm:$0xff] }
   0xf   :  { %v53_v43 = vld [vmem:[%s1158_s0] sm:$0xff]  ;;  %v54_v44 = vld [vmem:[%s1158_s0 + $0x8] sm:$0xff]  ;;  %v59_v51 = vld [vmem:[%s1158_s0 + $0x30] sm:$0xff] }
  0x10   :  { %v60_v52 = vld [vmem:[%s1158_s0 + $0x38] sm:$0xff]  ;;  %v55_v53 = vld [vmem:[%s1158_s0 + $0x10] sm:$0xff]  ;;  %v61_v63 = vld [vmem:[%s1158_s0 + $0x40] sm:$0xff] }
  0x11   :  { %v56_v54 = vld [vmem:[%s1158_s0 + $0x18] sm:$0xff]  ;;  %v63_v61 = vld [vmem:[%s1158_s0 + $0x50] sm:$0xff]  ;;  %v62_v0 = vld [vmem:[%s1158_s0 + $0x48] sm:$0xff] }
  0x12   :  { %180 = vperm.xlu1 %500, %v22_v9   ;;  %175 = vperm.xlu0 %499, %v21_v10   ;;  %v64_v62 = vld [vmem:[%s1158_s0 + $0x58] sm:$0xff]  ;;  %v67_v7 = vld [vmem:[%s1158_s0 + $0x70] sm:$0xff]  ;;  %v65_v9 = vld [vmem:[%s1158_s0 + $0x60] sm:$0xff] }
  0x13   :  { %v68_v8 = vld [vmem:[%s1158_s0 + $0x78] sm:$0xff]  ;;  %v66_v10 = vld [vmem:[%s1158_s0 + $0x68] sm:$0xff] }
  0x16   :  { %190 = vperm.xlu1 %500, %v24_v11   ;;  %185 = vperm.xlu0 %499, %v23_v12  }
  0x1a   :  { %200 = vperm.xlu1 %500, %v26_v13   ;;  %195 = vperm.xlu0 %499, %v25_v14  }
  0x1e   :  { %210 = vperm.xlu1 %500, %v28_v15   ;;  %205 = vperm.xlu0 %499, %v27_v16  }
  0x22   :  { %220 = vperm.xlu1 %500, %v30_v17   ;;  %215 = vperm.xlu0 %499, %v29_v18   ;;  %v71_v17 = vld [vmem:[%s1158_s0 + $0x90] sm:$0xff]  ;;  %v72_v18 = vld [vmem:[%s1158_s0 + $0x98] sm:$0xff] }
  0x26   :  { %230 = vperm.xlu1 %500, %v32_v19   ;;  %225 = vperm.xlu0 %499, %v31_v20   ;;  %v69_v19 = vld [vmem:[%s1158_s0 + $0x80] sm:$0xff]  ;;  %v70_v20 = vld [vmem:[%s1158_s0 + $0x88] sm:$0xff] }
  0x2a   :  { %240 = vperm.xlu1 %500, %v34_v21   ;;  %235 = vperm.xlu0 %499, %v33_v22  }
  0x2e   :  { %250 = vperm.xlu1 %500, %v36_v23   ;;  %245 = vperm.xlu0 %499, %v35_v24  }
  0x32   :  { %260 = vperm.xlu1 %500, %v38_v25   ;;  %255 = vperm.xlu0 %499, %v37_v26  }
  0x36   :  { %270 = vperm.xlu1 %500, %v40_v27   ;;  %265 = vperm.xlu0 %499, %v39_v28   ;;  %v75_v27 = vld [vmem:[%s1158_s0 + $0xb0] sm:$0xff]  ;;  %v76_v28 = vld [vmem:[%s1158_s0 + $0xb8] sm:$0xff] }
  0x3a   :  { %280 = vperm.xlu1 %500, %v42_v29   ;;  %275 = vperm.xlu0 %499, %v41_v30   ;;  %v73_v29 = vld [vmem:[%s1158_s0 + $0xa0] sm:$0xff]  ;;  %v74_v30 = vld [vmem:[%s1158_s0 + $0xa8] sm:$0xff] }
  0x3e   :  { %290 = vperm.xlu1 %500, %v44_v31   ;;  %285 = vperm.xlu0 %499, %v43_v32  }
  0x42   :  { %300 = vperm.xlu1 %500, %v46_v33   ;;  %295 = vperm.xlu0 %499, %v45_v34  }
  0x46   :  { %310 = vperm.xlu1 %500, %v48_v35   ;;  %305 = vperm.xlu0 %499, %v47_v36  }
  0x4a   :  { %320 = vperm.xlu1 %500, %v50_v37   ;;  %315 = vperm.xlu0 %499, %v49_v38   ;;  %v79_v37 = vld [vmem:[%s1158_s0 + $0xd0] sm:$0xff]  ;;  %v80_v38 = vld [vmem:[%s1158_s0 + $0xd8] sm:$0xff] }
  0x4e   :  { %330 = vperm.xlu1 %500, %v52_v39   ;;  %325 = vperm.xlu0 %499, %v51_v40   ;;  %v77_v39 = vld [vmem:[%s1158_s0 + $0xc0] sm:$0xff]  ;;  %v78_v40 = vld [vmem:[%s1158_s0 + $0xc8] sm:$0xff] }
  0x81   :  { %v146_v45 = vpop.permute.xlu1 %145  ;;  %v136_v46 = vpop.permute.xlu0 %135 }
  0x82   :  { %v337_v47 = vmul.f32 %v146_v45, %v57_v41  ;;  %v338_v48 = vmul.f32 %v146_v45, %v58_v42  ;;  %v333_v49 = vmul.f32 %v136_v46, %v53_v43  ;;  %v334_v50 = vmul.f32 %v136_v46, %v54_v44 }
  0x84   :  { %418 = vst [vmem:[%s1159_s2 + $0x20] sm:$0xff] %v337_v47  ;;  %419 = vst.msk [vmem:[%s1159_s2 + $0x28] sm:$0xff] %vm414_vm0, %v338_v48  ;;  %v83_v47 = vld [vmem:[%s1158_s0 + $0xf0] sm:$0xff]  ;;  %v84_v48 = vld [vmem:[%s1158_s0 + $0xf8] sm:$0xff] }
  0x85   :  { %413 = vst [vmem:[%s1159_s2] sm:$0xff] %v333_v49  ;;  %415 = vst.msk [vmem:[%s1159_s2 + $0x8] sm:$0xff] %vm414_vm0, %v334_v50  ;;  %v151_v55 = vpop.permute.xlu1 %150  ;;  %v141_v56 = vpop.permute.xlu0 %140  ;;  %v81_v49 = vld [vmem:[%s1158_s0 + $0xe0] sm:$0xff]  ;;  %v82_v50 = vld [vmem:[%s1158_s0 + $0xe8] sm:$0xff] }
  0x86   :  { %v339_v57 = vmul.f32 %v151_v55, %v59_v51  ;;  %v340_v58 = vmul.f32 %v151_v55, %v60_v52  ;;  %v335_v59 = vmul.f32 %v141_v56, %v55_v53  ;;  %v336_v60 = vmul.f32 %v141_v56, %v56_v54 }
  0x88   :  { %420 = vst [vmem:[%s1159_s2 + $0x30] sm:$0xff] %v339_v57  ;;  %421 = vst.msk [vmem:[%s1159_s2 + $0x38] sm:$0xff] %vm414_vm0, %v340_v58  ;;  %v87_v57 = vld [vmem:[%s1158_s0 + $0x110] sm:$0xff]  ;;  %v88_v58 = vld [vmem:[%s1158_s0 + $0x118] sm:$0xff] }
  0x89   :  { %416 = vst [vmem:[%s1159_s2 + $0x10] sm:$0xff] %v335_v59  ;;  %417 = vst.msk [vmem:[%s1159_s2 + $0x18] sm:$0xff] %vm414_vm0, %v336_v60  ;;  %v161_v1 = vpop.permute.xlu1 %160  ;;  %v156_v2 = vpop.permute.xlu0 %155  ;;  %v85_v59 = vld [vmem:[%s1158_s0 + $0x100] sm:$0xff]  ;;  %v86_v60 = vld [vmem:[%s1158_s0 + $0x108] sm:$0xff] }
  0x8a   :  { %v343_v3 = vmul.f32 %v161_v1, %v63_v61  ;;  %v344_v4 = vmul.f32 %v161_v1, %v64_v62  ;;  %v341_v5 = vmul.f32 %v156_v2, %v61_v63  ;;  %v342_v6 = vmul.f32 %v156_v2, %v62_v0 }
  0x8c   :  { %424 = vst [vmem:[%s1159_s2 + $0x50] sm:$0xff] %v343_v3  ;;  %425 = vst.msk [vmem:[%s1159_s2 + $0x58] sm:$0xff] %vm414_vm0, %v344_v4  ;;  %v91_v3 = vld [vmem:[%s1158_s0 + $0x130] sm:$0xff]  ;;  %v92_v4 = vld [vmem:[%s1158_s0 + $0x138] sm:$0xff] }
  0x8d   :  { %422 = vst [vmem:[%s1159_s2 + $0x40] sm:$0xff] %v341_v5  ;;  %423 = vst.msk [vmem:[%s1159_s2 + $0x48] sm:$0xff] %vm414_vm0, %v342_v6  ;;  %v171_v11 = vpop.permute.xlu1 %170  ;;  %v166_v12 = vpop.permute.xlu0 %165  ;;  %v89_v5 = vld [vmem:[%s1158_s0 + $0x120] sm:$0xff]  ;;  %v90_v6 = vld [vmem:[%s1158_s0 + $0x128] sm:$0xff] }
  0x8e   :  { %v347_v13 = vmul.f32 %v171_v11, %v67_v7  ;;  %v348_v14 = vmul.f32 %v171_v11, %v68_v8  ;;  %v345_v15 = vmul.f32 %v166_v12, %v65_v9  ;;  %v346_v16 = vmul.f32 %v166_v12, %v66_v10 }
  0x90   :  { %428 = vst [vmem:[%s1159_s2 + $0x70] sm:$0xff] %v347_v13  ;;  %429 = vst.msk [vmem:[%s1159_s2 + $0x78] sm:$0xff] %vm414_vm0, %v348_v14  ;;  %v95_v13 = vld [vmem:[%s1158_s0 + $0x150] sm:$0xff]  ;;  %v96_v14 = vld [vmem:[%s1158_s0 + $0x158] sm:$0xff] }
  0x91   :  { %426 = vst [vmem:[%s1159_s2 + $0x60] sm:$0xff] %v345_v15  ;;  %427 = vst.msk [vmem:[%s1159_s2 + $0x68] sm:$0xff] %vm414_vm0, %v346_v16  ;;  %v181_v21 = vpop.permute.xlu1 %180  ;;  %v176_v22 = vpop.permute.xlu0 %175  ;;  %v93_v15 = vld [vmem:[%s1158_s0 + $0x140] sm:$0xff]  ;;  %v94_v16 = vld [vmem:[%s1158_s0 + $0x148] sm:$0xff] }
  0x92   :  { %v351_v23 = vmul.f32 %v181_v21, %v71_v17  ;;  %v352_v24 = vmul.f32 %v181_v21, %v72_v18  ;;  %v349_v25 = vmul.f32 %v176_v22, %v69_v19  ;;  %v350_v26 = vmul.f32 %v176_v22, %v70_v20 }
  0x94   :  { %432 = vst [vmem:[%s1159_s2 + $0x90] sm:$0xff] %v351_v23  ;;  %433 = vst.msk [vmem:[%s1159_s2 + $0x98] sm:$0xff] %vm414_vm0, %v352_v24  ;;  %v99_v23 = vld [vmem:[%s1158_s0 + $0x170] sm:$0xff]  ;;  %v100_v24 = vld [vmem:[%s1158_s0 + $0x178] sm:$0xff] }
  0x95   :  { %430 = vst [vmem:[%s1159_s2 + $0x80] sm:$0xff] %v349_v25  ;;  %431 = vst.msk [vmem:[%s1159_s2 + $0x88] sm:$0xff] %vm414_vm0, %v350_v26  ;;  %v191_v31 = vpop.permute.xlu1 %190  ;;  %v186_v32 = vpop.permute.xlu0 %185  ;;  %v97_v25 = vld [vmem:[%s1158_s0 + $0x160] sm:$0xff]  ;;  %v98_v26 = vld [vmem:[%s1158_s0 + $0x168] sm:$0xff] }
  0x96   :  { %v355_v33 = vmul.f32 %v191_v31, %v75_v27  ;;  %v356_v34 = vmul.f32 %v191_v31, %v76_v28  ;;  %v353_v35 = vmul.f32 %v186_v32, %v73_v29  ;;  %v354_v36 = vmul.f32 %v186_v32, %v74_v30 }
  0x98   :  { %436 = vst [vmem:[%s1159_s2 + $0xb0] sm:$0xff] %v355_v33  ;;  %437 = vst.msk [vmem:[%s1159_s2 + $0xb8] sm:$0xff] %vm414_vm0, %v356_v34  ;;  %v103_v33 = vld [vmem:[%s1158_s0 + $0x190] sm:$0xff]  ;;  %v104_v34 = vld [vmem:[%s1158_s0 + $0x198] sm:$0xff] }
  0x99   :  { %434 = vst [vmem:[%s1159_s2 + $0xa0] sm:$0xff] %v353_v35  ;;  %435 = vst.msk [vmem:[%s1159_s2 + $0xa8] sm:$0xff] %vm414_vm0, %v354_v36  ;;  %v201_v41 = vpop.permute.xlu1 %200  ;;  %v196_v42 = vpop.permute.xlu0 %195  ;;  %v101_v35 = vld [vmem:[%s1158_s0 + $0x180] sm:$0xff]  ;;  %v102_v36 = vld [vmem:[%s1158_s0 + $0x188] sm:$0xff] }
  0x9a   :  { %v359_v43 = vmul.f32 %v201_v41, %v79_v37  ;;  %v360_v44 = vmul.f32 %v201_v41, %v80_v38  ;;  %v357_v45 = vmul.f32 %v196_v42, %v77_v39  ;;  %v358_v46 = vmul.f32 %v196_v42, %v78_v40 }
  0x9c   :  { %440 = vst [vmem:[%s1159_s2 + $0xd0] sm:$0xff] %v359_v43  ;;  %441 = vst.msk [vmem:[%s1159_s2 + $0xd8] sm:$0xff] %vm414_vm0, %v360_v44  ;;  %v107_v43 = vld [vmem:[%s1158_s0 + $0x1b0] sm:$0xff]  ;;  %v108_v44 = vld [vmem:[%s1158_s0 + $0x1b8] sm:$0xff] }
  0x9d   :  { %438 = vst [vmem:[%s1159_s2 + $0xc0] sm:$0xff] %v357_v45  ;;  %439 = vst.msk [vmem:[%s1159_s2 + $0xc8] sm:$0xff] %vm414_vm0, %v358_v46  ;;  %v211_v51 = vpop.permute.xlu1 %210  ;;  %v206_v52 = vpop.permute.xlu0 %205  ;;  %v105_v45 = vld [vmem:[%s1158_s0 + $0x1a0] sm:$0xff]  ;;  %v106_v46 = vld [vmem:[%s1158_s0 + $0x1a8] sm:$0xff] }
  0x9e   :  { %v363_v53 = vmul.f32 %v211_v51, %v83_v47  ;;  %v364_v54 = vmul.f32 %v211_v51, %v84_v48  ;;  %v361_v55 = vmul.f32 %v206_v52, %v81_v49  ;;  %v362_v56 = vmul.f32 %v206_v52, %v82_v50 }
  0xa0   :  { %444 = vst [vmem:[%s1159_s2 + $0xf0] sm:$0xff] %v363_v53  ;;  %445 = vst.msk [vmem:[%s1159_s2 + $0xf8] sm:$0xff] %vm414_vm0, %v364_v54  ;;  %v111_v53 = vld [vmem:[%s1158_s0 + $0x1d0] sm:$0xff]  ;;  %v112_v54 = vld [vmem:[%s1158_s0 + $0x1d8] sm:$0xff] }
  0xa1   :  { %442 = vst [vmem:[%s1159_s2 + $0xe0] sm:$0xff] %v361_v55  ;;  %443 = vst.msk [vmem:[%s1159_s2 + $0xe8] sm:$0xff] %vm414_vm0, %v362_v56  ;;  %v221_v61 = vpop.permute.xlu1 %220  ;;  %v216_v62 = vpop.permute.xlu0 %215  ;;  %v109_v55 = vld [vmem:[%s1158_s0 + $0x1c0] sm:$0xff]  ;;  %v110_v56 = vld [vmem:[%s1158_s0 + $0x1c8] sm:$0xff] }
  0xa2   :  { %v367_v63 = vmul.f32 %v221_v61, %v87_v57  ;;  %v368_v0 = vmul.f32 %v221_v61, %v88_v58  ;;  %v365_v1 = vmul.f32 %v216_v62, %v85_v59  ;;  %v366_v2 = vmul.f32 %v216_v62, %v86_v60 }
  0xa4   :  { %448 = vst [vmem:[%s1159_s2 + $0x110] sm:$0xff] %v367_v63  ;;  %449 = vst.msk [vmem:[%s1159_s2 + $0x118] sm:$0xff] %vm414_vm0, %v368_v0  ;;  %v115_v63 = vld [vmem:[%s1158_s0 + $0x1f0] sm:$0xff]  ;;  %v116_v0 = vld [vmem:[%s1158_s0 + $0x1f8] sm:$0xff] }
  0xa5   :  { %446 = vst [vmem:[%s1159_s2 + $0x100] sm:$0xff] %v365_v1  ;;  %447 = vst.msk [vmem:[%s1159_s2 + $0x108] sm:$0xff] %vm414_vm0, %v366_v2  ;;  %v231_v7 = vpop.permute.xlu1 %230  ;;  %v226_v8 = vpop.permute.xlu0 %225  ;;  %v113_v1 = vld [vmem:[%s1158_s0 + $0x1e0] sm:$0xff]  ;;  %v114_v2 = vld [vmem:[%s1158_s0 + $0x1e8] sm:$0xff] }
  0xa6   :  { %v371_v9 = vmul.f32 %v231_v7, %v91_v3  ;;  %v372_v10 = vmul.f32 %v231_v7, %v92_v4  ;;  %v369_v11 = vmul.f32 %v226_v8, %v89_v5  ;;  %v370_v12 = vmul.f32 %v226_v8, %v90_v6 }
  0xa8   :  { %452 = vst [vmem:[%s1159_s2 + $0x130] sm:$0xff] %v371_v9  ;;  %453 = vst.msk [vmem:[%s1159_s2 + $0x138] sm:$0xff] %vm414_vm0, %v372_v10  ;;  %v119_v9 = vld [vmem:[%s1158_s0 + $0x210] sm:$0xff]  ;;  %v120_v10 = vld [vmem:[%s1158_s0 + $0x218] sm:$0xff] }
  0xa9   :  { %450 = vst [vmem:[%s1159_s2 + $0x120] sm:$0xff] %v369_v11  ;;  %451 = vst.msk [vmem:[%s1159_s2 + $0x128] sm:$0xff] %vm414_vm0, %v370_v12  ;;  %v241_v17 = vpop.permute.xlu1 %240  ;;  %v236_v18 = vpop.permute.xlu0 %235  ;;  %v117_v11 = vld [vmem:[%s1158_s0 + $0x200] sm:$0xff]  ;;  %v118_v12 = vld [vmem:[%s1158_s0 + $0x208] sm:$0xff] }
  0xaa   :  { %v375_v19 = vmul.f32 %v241_v17, %v95_v13  ;;  %v376_v20 = vmul.f32 %v241_v17, %v96_v14  ;;  %v373_v21 = vmul.f32 %v236_v18, %v93_v15  ;;  %v374_v22 = vmul.f32 %v236_v18, %v94_v16 }
  0xac   :  { %456 = vst [vmem:[%s1159_s2 + $0x150] sm:$0xff] %v375_v19  ;;  %457 = vst.msk [vmem:[%s1159_s2 + $0x158] sm:$0xff] %vm414_vm0, %v376_v20  ;;  %v123_v19 = vld [vmem:[%s1158_s0 + $0x230] sm:$0xff]  ;;  %v124_v20 = vld [vmem:[%s1158_s0 + $0x238] sm:$0xff] }
  0xad   :  { %454 = vst [vmem:[%s1159_s2 + $0x140] sm:$0xff] %v373_v21  ;;  %455 = vst.msk [vmem:[%s1159_s2 + $0x148] sm:$0xff] %vm414_vm0, %v374_v22  ;;  %v251_v27 = vpop.permute.xlu1 %250  ;;  %v246_v28 = vpop.permute.xlu0 %245  ;;  %v121_v21 = vld [vmem:[%s1158_s0 + $0x220] sm:$0xff]  ;;  %v122_v22 = vld [vmem:[%s1158_s0 + $0x228] sm:$0xff] }
  0xae   :  { %v379_v29 = vmul.f32 %v251_v27, %v99_v23  ;;  %v380_v30 = vmul.f32 %v251_v27, %v100_v24  ;;  %v377_v31 = vmul.f32 %v246_v28, %v97_v25  ;;  %v378_v32 = vmul.f32 %v246_v28, %v98_v26 }
  0xb0   :  { %460 = vst [vmem:[%s1159_s2 + $0x170] sm:$0xff] %v379_v29  ;;  %461 = vst.msk [vmem:[%s1159_s2 + $0x178] sm:$0xff] %vm414_vm0, %v380_v30  ;;  %v127_v29 = vld [vmem:[%s1158_s0 + $0x250] sm:$0xff]  ;;  %v128_v30 = vld [vmem:[%s1158_s0 + $0x258] sm:$0xff] }
  0xb1   :  { %458 = vst [vmem:[%s1159_s2 + $0x160] sm:$0xff] %v377_v31  ;;  %459 = vst.msk [vmem:[%s1159_s2 + $0x168] sm:$0xff] %vm414_vm0, %v378_v32  ;;  %v261_v37 = vpop.permute.xlu1 %260  ;;  %v256_v38 = vpop.permute.xlu0 %255  ;;  %v125_v31 = vld [vmem:[%s1158_s0 + $0x240] sm:$0xff]  ;;  %v126_v32 = vld [vmem:[%s1158_s0 + $0x248] sm:$0xff] }
  0xb2   :  { %v383_v39 = vmul.f32 %v261_v37, %v103_v33  ;;  %v384_v40 = vmul.f32 %v261_v37, %v104_v34  ;;  %v381_v41 = vmul.f32 %v256_v38, %v101_v35  ;;  %v382_v42 = vmul.f32 %v256_v38, %v102_v36 }
  0xb4   :  { %464 = vst [vmem:[%s1159_s2 + $0x190] sm:$0xff] %v383_v39  ;;  %465 = vst.msk [vmem:[%s1159_s2 + $0x198] sm:$0xff] %vm414_vm0, %v384_v40  ;;  %v131_v39 = vld [vmem:[%s1158_s0 + $0x270] sm:$0xff]  ;;  %v132_v40 = vld [vmem:[%s1158_s0 + $0x278] sm:$0xff] }
  0xb5   :  { %462 = vst [vmem:[%s1159_s2 + $0x180] sm:$0xff] %v381_v41  ;;  %463 = vst.msk [vmem:[%s1159_s2 + $0x188] sm:$0xff] %vm414_vm0, %v382_v42  ;;  %v271_v47 = vpop.permute.xlu1 %270  ;;  %v266_v48 = vpop.permute.xlu0 %265  ;;  %v129_v41 = vld [vmem:[%s1158_s0 + $0x260] sm:$0xff]  ;;  %v130_v42 = vld [vmem:[%s1158_s0 + $0x268] sm:$0xff] }
  0xb6   :  { %v387_v49 = vmul.f32 %v271_v47, %v107_v43  ;;  %v388_v50 = vmul.f32 %v271_v47, %v108_v44  ;;  %v385_v51 = vmul.f32 %v266_v48, %v105_v45  ;;  %v386_v52 = vmul.f32 %v266_v48, %v106_v46 }
  0xb8   :  { %468 = vst [vmem:[%s1159_s2 + $0x1b0] sm:$0xff] %v387_v49  ;;  %469 = vst.msk [vmem:[%s1159_s2 + $0x1b8] sm:$0xff] %vm414_vm0, %v388_v50 }
  0xb9   :  { %466 = vst [vmem:[%s1159_s2 + $0x1a0] sm:$0xff] %v385_v51  ;;  %467 = vst.msk [vmem:[%s1159_s2 + $0x1a8] sm:$0xff] %vm414_vm0, %v386_v52  ;;  %v281_v57 = vpop.permute.xlu1 %280  ;;  %v276_v58 = vpop.permute.xlu0 %275 }
  0xba   :  { %v391_v59 = vmul.f32 %v281_v57, %v111_v53  ;;  %v392_v60 = vmul.f32 %v281_v57, %v112_v54  ;;  %v389_v61 = vmul.f32 %v276_v58, %v109_v55  ;;  %v390_v62 = vmul.f32 %v276_v58, %v110_v56 }
  0xbc   :  { %472 = vst [vmem:[%s1159_s2 + $0x1d0] sm:$0xff] %v391_v59  ;;  %473 = vst.msk [vmem:[%s1159_s2 + $0x1d8] sm:$0xff] %vm414_vm0, %v392_v60 }
  0xbd   :  { %470 = vst [vmem:[%s1159_s2 + $0x1c0] sm:$0xff] %v389_v61  ;;  %471 = vst.msk [vmem:[%s1159_s2 + $0x1c8] sm:$0xff] %vm414_vm0, %v390_v62  ;;  %v291_v3 = vpop.permute.xlu1 %290  ;;  %v286_v4 = vpop.permute.xlu0 %285 }
  0xbe   :  { %v395_v5 = vmul.f32 %v291_v3, %v115_v63  ;;  %v396_v6 = vmul.f32 %v291_v3, %v116_v0  ;;  %v393_v7 = vmul.f32 %v286_v4, %v113_v1  ;;  %v394_v8 = vmul.f32 %v286_v4, %v114_v2 }
  0xc0   :  { %476 = vst [vmem:[%s1159_s2 + $0x1f0] sm:$0xff] %v395_v5  ;;  %477 = vst.msk [vmem:[%s1159_s2 + $0x1f8] sm:$0xff] %vm414_vm0, %v396_v6 }
  0xc1   :  { %474 = vst [vmem:[%s1159_s2 + $0x1e0] sm:$0xff] %v393_v7  ;;  %475 = vst.msk [vmem:[%s1159_s2 + $0x1e8] sm:$0xff] %vm414_vm0, %v394_v8  ;;  %v301_v13 = vpop.permute.xlu1 %300  ;;  %v296_v14 = vpop.permute.xlu0 %295 }
  0xc2   :  { %v399_v15 = vmul.f32 %v301_v13, %v119_v9  ;;  %v400_v16 = vmul.f32 %v301_v13, %v120_v10  ;;  %v397_v17 = vmul.f32 %v296_v14, %v117_v11  ;;  %v398_v18 = vmul.f32 %v296_v14, %v118_v12 }
  0xc4   :  { %480 = vst [vmem:[%s1159_s2 + $0x210] sm:$0xff] %v399_v15  ;;  %481 = vst.msk [vmem:[%s1159_s2 + $0x218] sm:$0xff] %vm414_vm0, %v400_v16 }
  0xc5   :  { %478 = vst [vmem:[%s1159_s2 + $0x200] sm:$0xff] %v397_v17  ;;  %479 = vst.msk [vmem:[%s1159_s2 + $0x208] sm:$0xff] %vm414_vm0, %v398_v18  ;;  %v311_v23 = vpop.permute.xlu1 %310  ;;  %v306_v24 = vpop.permute.xlu0 %305 }
  0xc6   :  { %v403_v25 = vmul.f32 %v311_v23, %v123_v19  ;;  %v404_v26 = vmul.f32 %v311_v23, %v124_v20  ;;  %v401_v27 = vmul.f32 %v306_v24, %v121_v21  ;;  %v402_v28 = vmul.f32 %v306_v24, %v122_v22 }
  0xc8   :  { %484 = vst [vmem:[%s1159_s2 + $0x230] sm:$0xff] %v403_v25  ;;  %485 = vst.msk [vmem:[%s1159_s2 + $0x238] sm:$0xff] %vm414_vm0, %v404_v26 }
  0xc9   :  { %482 = vst [vmem:[%s1159_s2 + $0x220] sm:$0xff] %v401_v27  ;;  %483 = vst.msk [vmem:[%s1159_s2 + $0x228] sm:$0xff] %vm414_vm0, %v402_v28  ;;  %v321_v33 = vpop.permute.xlu1 %320  ;;  %v316_v34 = vpop.permute.xlu0 %315 }
  0xca   :  { %v407_v35 = vmul.f32 %v321_v33, %v127_v29  ;;  %v408_v36 = vmul.f32 %v321_v33, %v128_v30  ;;  %v405_v37 = vmul.f32 %v316_v34, %v125_v31  ;;  %v406_v38 = vmul.f32 %v316_v34, %v126_v32 }
  0xcc   :  { %488 = vst [vmem:[%s1159_s2 + $0x250] sm:$0xff] %v407_v35  ;;  %489 = vst.msk [vmem:[%s1159_s2 + $0x258] sm:$0xff] %vm414_vm0, %v408_v36 }
  0xcd   :  { %486 = vst [vmem:[%s1159_s2 + $0x240] sm:$0xff] %v405_v37  ;;  %487 = vst.msk [vmem:[%s1159_s2 + $0x248] sm:$0xff] %vm414_vm0, %v406_v38  ;;  %v331_v43 = vpop.permute.xlu1 %330  ;;  %v326_v44 = vpop.permute.xlu0 %325 }
  0xce   :  { %v411_v45 = vmul.f32 %v331_v43, %v131_v39  ;;  %v412_v46 = vmul.f32 %v331_v43, %v132_v40  ;;  %v409_v47 = vmul.f32 %v326_v44, %v129_v41  ;;  %v410_v48 = vmul.f32 %v326_v44, %v130_v42 }
  0xd0   :  { %492 = vst [vmem:[%s1159_s2 + $0x270] sm:$0xff] %v411_v45  ;;  %493 = vst.msk [vmem:[%s1159_s2 + $0x278] sm:$0xff] %vm414_vm0, %v412_v46 }
  0xd1   :  { %490 = vst [vmem:[%s1159_s2 + $0x260] sm:$0xff] %v409_v47  ;;  %491 = vst.msk [vmem:[%s1159_s2 + $0x268] sm:$0xff] %vm414_vm0, %v410_v48 }

</bundles_post_ra>
